<compile_context>
chip_gen: v7x
topology: tpu7x:2x2x1
jax: 0.10.0
libtpu: 0.0.40
codegen_flags: <defaults>
</compile_context>

<pallas_src>
import functools

import jax
import jax.numpy as jnp
from jax.experimental import pallas as pl
from jax.experimental.pallas import tpu as pltpu

DOWNSAMPLE_FACTOR = 8
PADDING = max(0, DOWNSAMPLE_FACTOR // 2 - 1)  # = 3, matches the PyTorch module


def _avgpool_kernel(x_ref, b_ref, o_ref, *, bnc, hp, K, P, Ho):
    # x_ref: (bnc*hp, W)   rows of `bnc` flattened (n, c) slices, native dtype
    # b_ref: (W, Wo)       column-pool selector with the 1/K^2 divisor folded in
    # o_ref: (bnc, Ho, Wo)
    Wo = b_ref.shape[1]

    # 1) Pool over W (and apply 1/K^2): one rank-2 MXU matmul contracting the lane dim.
    r = jnp.dot(x_ref[...], b_ref[...], preferred_element_type=jnp.float32)  # (bnc*hp, Wo)

    # hp % 8 == 0 by construction, so this leading-dim split is a pure layout view (no relayout).
    r3 = r.reshape(bnc, hp, Wo)

    # 2) Pool over H on the 8x-reduced intermediate with static row-window sums.
    #    Rows >= original H are zero padding, so clipping the window at hp is exact
    #    (count_include_pad=True semantics).
    for oh in range(Ho):
        h0 = max(0, oh * K - P)
        h1 = min(hp, oh * K - P + K)
        window_sum = jnp.sum(r3[:, h0:h1, :], axis=1, keepdims=True)  # (bnc, 1, Wo)
        o_ref[:, oh:oh + 1, :] = window_sum.astype(o_ref.dtype)


def _cdiv(a, b):
    return -(-a // b)


def _pick_block_nc(nc, slice_bytes, target_bytes=4 * 1024 * 1024):
    """Byte-driven block size (no divisor-of-NC constraint); prefer an even grid of >= 2 steps
    so the 'parallel' grid axis can be sharded across both v7x TensorCores."""
    b = max(1, target_bytes // max(1, slice_bytes))
    if b >= nc:
        b = nc if nc <= 1 else _cdiv(nc, 2)
    else:
        g = _cdiv(nc, b)
        if g > 2 and g % 2 == 1:
            b = _cdiv(nc, g + 1)
    return int(max(1, min(b, nc)))


def _pool_selector(W, Wo, K, P, scale, dtype):
    # sel[w, ov] = scale if input column w lies inside output window ov (in-bounds part only;
    # out-of-bounds columns are zero padding and contribute nothing), else 0.
    w = jax.lax.broadcasted_iota(jnp.int32, (W, Wo), 0)
    ov = jax.lax.broadcasted_iota(jnp.int32, (W, Wo), 1)
    start = ov * K - P
    sel = (w >= start) & (w < start + K)
    return jnp.where(sel, jnp.float32(scale), jnp.float32(0.0)).astype(dtype)


def avg_downsampling(x, *, block_nc=None):
    """x: (N, C, H, W) -> (N, C, Ho, Wo); identical semantics to
    nn.AvgPool2d(kernel_size=8, stride=8, padding=3) (count_include_pad=True, ceil_mode=False)."""
    N, C, H, W = x.shape
    K, P = DOWNSAMPLE_FACTOR, PADDING
    Ho = (H + 2 * P - K) // K + 1
    Wo = (W + 2 * P - K) // K + 1
    NC = N * C

    if not jnp.issubdtype(x.dtype, jnp.floating):
        x = x.astype(jnp.float32)
    dtype = x.dtype
    isz = dtype.itemsize

    # Sublane-align H (pad with zeros) only when needed; the zero rows coincide with the
    # pooling's own zero padding, so the result is unchanged.
    Hp = _cdiv(H, 8) * 8
    if Hp != H:
        x = jnp.pad(x, ((0, 0), (0, 0), (0, Hp - H), (0, 0)))

    x2 = x.reshape(NC * Hp, W)  # free: merges contiguous leading dims

    # 1/K^2 folded into the selector (exact: power of two); kept in the input dtype so the MXU
    # consumes bf16/f32 operands directly (no in-kernel upcast pass).
    b_mat = _pool_selector(W, Wo, K, P, 1.0 / float(K * K), dtype)

    if block_nc is None:
        block_nc = _pick_block_nc(NC, Hp * W * isz)
    block_nc = max(1, min(int(block_nc), NC))
    grid = (_cdiv(NC, block_nc),)

    kernel = functools.partial(_avgpool_kernel, bnc=block_nc, hp=Hp, K=K, P=P, Ho=Ho)

    # VMEM budget: double-buffered input/selector/output blocks + the f32 intermediate.
    in_block = block_nc * Hp * W * isz
    out_block = block_nc * Ho * Wo * isz
    need = 2 * in_block + 2 * out_block + 2 * W * Wo * isz + block_nc * Hp * Wo * 4
    vmem_limit = int(min(48 * 1024 * 1024, max(32 * 1024 * 1024, 2 * need)))

    cost = pl.CostEstimate(
        flops=2 * NC * Hp * W * Wo + NC * Hp * Wo,
        transcendentals=0,
        bytes_accessed=NC * Hp * W * isz + NC * Ho * Wo * isz + W * Wo * isz,
    )

    out_flat = pl.pallas_call(
        kernel,
        out_shape=jax.ShapeDtypeStruct((NC, Ho, Wo), dtype),
        grid=grid,
        in_specs=[
            pl.BlockSpec((block_nc * Hp, W), lambda g: (g, 0)),
            pl.BlockSpec((W, Wo), lambda g: (0, 0)),  # constant block index -> DMA'd once
        ],
        out_specs=pl.BlockSpec((block_nc, Ho, Wo), lambda g: (g, 0, 0)),
        compiler_params=pltpu.CompilerParams(
            dimension_semantics=("parallel",),
            vmem_limit_bytes=vmem_limit,
        ),
        cost_estimate=cost,
    )(x2, b_mat)

    return out_flat.reshape(N, C, Ho, Wo)


def _reference(x):
    # pure-JAX reference of AvgPool2d(8, 8, padding=3, count_include_pad=True)
    K, P = DOWNSAMPLE_FACTOR, PADDING
    xf = x.astype(jnp.float32)
    summed = jax.lax.reduce_window(
        xf, 0.0, jax.lax.add,
        window_dimensions=(1, 1, K, K),
        window_strides=(1, 1, K, K),
        padding=((0, 0), (0, 0), (P, P), (P, P)),
    )
    return summed / float(K * K)


if __name__ == "__main__":
    # Base case (H, W multiples of 8).
    x = jax.random.normal(jax.random.PRNGKey(0), (2, 4, 16, 16), dtype=jnp.float32)
    out = jax.block_until_ready(avg_downsampling(x))
    ref = _reference(x)
    assert out.shape == ref.shape, (out.shape, ref.shape)
    assert jnp.allclose(out, ref, atol=1e-5, rtol=1e-5), "mismatch vs reference"

    # Clipped last window + H not a multiple of 8 (exercises the sublane-pad path).
    x2 = jax.random.normal(jax.random.PRNGKey(1), (1, 2, 20, 20), dtype=jnp.float32)
    out2 = jax.block_until_ready(avg_downsampling(x2))
    ref2 = _reference(x2)
    assert out2.shape == ref2.shape, (out2.shape, ref2.shape)
    assert jnp.allclose(out2, ref2, atol=1e-5, rtol=1e-5), "mismatch (clipped window / padded H)"

    # NC not divisible by the chosen block -> partial last grid block.
    x3 = jax.random.normal(jax.random.PRNGKey(2), (1, 3, 16, 16), dtype=jnp.float32)
    out3 = jax.block_until_ready(avg_downsampling(x3))
    ref3 = _reference(x3)
    assert out3.shape == ref3.shape, (out3.shape, ref3.shape)
    assert jnp.allclose(out3, ref3, atol=1e-5, rtol=1e-5), "mismatch (partial last block)"

    # bf16 path: selector stays in bf16 (values 0 and 1/64 are exact), MXU accumulates in f32.
    x4 = jax.random.normal(jax.random.PRNGKey(3), (2, 4, 16, 16), dtype=jnp.bfloat16)
    out4 = jax.block_until_ready(avg_downsampling(x4))
    ref4 = _reference(x4)
    assert out4.shape == ref4.shape, (out4.shape, ref4.shape)
    assert jnp.allclose(out4.astype(jnp.float32), ref4, atol=2e-2, rtol=2e-2), "mismatch (bf16)"

    print("KERNEL_OK")
</pallas_src>

<mosaic_0001>
module attributes {stable_mosaic.version = 11 : i64} {
  func.func @_avgpool_kernel(%arg0: i32, %arg1: memref<64x16xf32, #tpu.memory_space<vmem>>, %arg2: memref<16x2xf32, #tpu.memory_space<vmem>>, %arg3: memref<4x2x2xf32, #tpu.memory_space<vmem>>) attributes {dimension_semantics = [#tpu.dimension_semantics<parallel>], iteration_bounds = array<i64: 2>, scalar_prefetch = 0 : i64, scratch_operands = 0 : i64, tpu.core_type = #tpu.core_type<tc>, window_params = [{transform_indices = @transform_0, window_bounds = array<i64: 64, 16>}, {pipeline_mode = #tpu.pipeline_mode<synchronous>, transform_indices = @transform_1, window_bounds = array<i64: 16, 2>}, {transform_indices = @transform_2, window_bounds = array<i64: 4, 2, 2>}]} {
    %c0 = arith.constant 0 : index
    %c0_0 = arith.constant 0 : index
    %0 = vector.load %arg1[%c0, %c0_0] : memref<64x16xf32, #tpu.memory_space<vmem>>, vector<64x16xf32>
    %c0_1 = arith.constant 0 : index
    %c0_2 = arith.constant 0 : index
    %1 = vector.load %arg2[%c0_1, %c0_2] : memref<16x2xf32, #tpu.memory_space<vmem>>, vector<16x2xf32>
    %cst = arith.constant dense<0.000000e+00> : vector<64x2xf32>
    %2 = tpu.matmul %0, %1, %cst {dimension_numbers = #tpu.dot_dimension_numbers<[1], [0], [0], [1], [0, 0, 1, 1], [], []>} : vector<64x16xf32>, vector<16x2xf32>, vector<64x2xf32> -> vector<64x2xf32>
    %3 = vector.shape_cast %2 : vector<64x2xf32> to vector<4x16x2xf32>
    %4 = vector.extract_strided_slice %3 {offsets = [0, 0, 0], sizes = [4, 5, 2], strides = [1, 1, 1]} : vector<4x16x2xf32> to vector<4x5x2xf32>
    %cst_3 = arith.constant dense<0.000000e+00> : vector<4x2xf32>
    %5 = vector.multi_reduction <add>, %4, %cst_3 [1] : vector<4x5x2xf32> to vector<4x2xf32>
    %6 = vector.shape_cast %5 : vector<4x2xf32> to vector<4x1x2xf32>
    %c0_4 = arith.constant 0 : index
    %c0_5 = arith.constant 0 : index
    %c0_6 = arith.constant 0 : index
    %7 = vector.load %arg3[%c0_4, %c0_5, %c0_6] : memref<4x2x2xf32, #tpu.memory_space<vmem>>, vector<4x1x2xf32>
    tpu.vector_store %arg3[%c0_4, %c0_5, %c0_6], %6 {strides = array<i32>} : memref<4x2x2xf32, #tpu.memory_space<vmem>>, vector<4x1x2xf32>,
    %8 = vector.extract_strided_slice %3 {offsets = [0, 5, 0], sizes = [4, 8, 2], strides = [1, 1, 1]} : vector<4x16x2xf32> to vector<4x8x2xf32>
    %cst_7 = arith.constant dense<0.000000e+00> : vector<4x2xf32>
    %9 = vector.multi_reduction <add>, %8, %cst_7 [1] : vector<4x8x2xf32> to vector<4x2xf32>
    %10 = vector.shape_cast %9 : vector<4x2xf32> to vector<4x1x2xf32>
    %c0_8 = arith.constant 0 : index
    %c1 = arith.constant 1 : index
    %c0_9 = arith.constant 0 : index
    %11 = vector.load %arg3[%c0_8, %c1, %c0_9] : memref<4x2x2xf32, #tpu.memory_space<vmem>>, vector<4x1x2xf32>
    tpu.vector_store %arg3[%c0_8, %c1, %c0_9], %10 {strides = array<i32>} : memref<4x2x2xf32, #tpu.memory_space<vmem>>, vector<4x1x2xf32>,
    return
  }
  func.func @transform_0(%arg0: i32) -> (i32, i32) {
    %c0_i32 = arith.constant 0 : i32
    %c0_i32_0 = arith.constant 0 : i32
    return %arg0, %c0_i32 : i32, i32
  }
  func.func @transform_1(%arg0: i32) -> (i32, i32) {
    %c0_i32 = arith.constant 0 : i32
    %c0_i32_0 = arith.constant 0 : i32
    %c0_i32_1 = arith.constant 0 : i32
    return %c0_i32, %c0_i32_0 : i32, i32
  }
  func.func @transform_2(%arg0: i32) -> (i32, i32, i32) {
    %c0_i32 = arith.constant 0 : i32
    %c0_i32_0 = arith.constant 0 : i32
    %c0_i32_1 = arith.constant 0 : i32
    return %arg0, %c0_i32, %c0_i32_0 : i32, i32, i32
  }
}

</mosaic_0001>

<bundles_post_ra>
// kernel: tpu_custom_call.1
= control target key start
LH: loop header
LB: loop body
LE: loop exit
PB: predicated region body
PF: predicated region fallthrough
CT: control target
= control target key end

     0   :  { %s517_s9 = smov 0   ;;  %s586_s0 = inlined_call_operand.vmem [shape: f32[128,16], index: 0, kind: input, shape index: {}]   ;;  %s587_s1 = inlined_call_operand.vmem [shape: f32[16,2], index: 1, kind: input, shape index: {}]   ;;  %s588_s2 = inlined_call_operand.vmem [shape: f32[8,2,2], index: 2, kind: output, shape index: {}]  }
   0x1 LB: > { %s435_s10 = sadd.s32 4294967295, %s500_s9   ;;  %p439_p0 = scmp.ge.s32.totalorder %s500_s9, 1  ;;  %s500_s9 = sphi %s517_s9, %s12_s9  }
   0x2   : > { %p113_p1 = scmp.lt.s32.totalorder %s500_s9, 3 }
   0x4   : > { %p114_p2 = pnand %p439_p0, %p113_p1 }
   0x5   : > { %v155_v0 = vld [vmem:[%s587_s1] sm:$0xff] (!%p114_p2)  ;;  %v156_v1 = vld [vmem:[%s587_s1 + $0x8] sm:$0xff] (!%p114_p2)  ;;  %s440_s15 = sshll.u32 (!%p114_p2), %s435_s10, 3  ;;  %vm157_vm0 = vcmask (!%p114_p2), 130048   ;;  %s442_s20 = sshll.u32 (!%p114_p2), %s435_s10, 2  ;;  %vm287_vm1 = vcmask (!%p114_p2), 12288  }
   0x6   : > { %117 = sbr.rel (%p114_p2) target bundleno = 258 (0x102), region = 28  ;;  %v480_v2 = vpack.c.bf16 (!%p114_p2), %v156_v1, %v155_v0  ;;  %p136_p3 = scmp.lt.s32.totalorder (!%p114_p2), %s440_s15, 15  ;;  %vm329_vm2 = vcmask (!%p114_p2), 1042432   ;;  %vm346_vm3 = vcmask (!%p114_p2), 15360   ;;  %vm316_vm4 = vcmask (!%p114_p2), 8192  }
   0x7   : > { %p142_p4 = scmp.lt.s32.totalorder (!%p114_p2), %s442_s20, 7 }
   0x8   : > { %481 = vmatprep.subr.bf16.mxu0 (!%p114_p2), %v480_v2  ;;  %484 = vmatprep.subr.bf16.mxu1 (!%p114_p2), %v480_v2 }
   0x9   : > { %483 = vmatpush3.bf16.msra.mxu0 (!%p114_p2), %v480_v2  ;;  %485 = vmatpush3.bf16.msra.mxu1 (!%p114_p2), %v480_v2 }
   0xd   : > { %s590_s15 = smov (!%p136_p3, %s440_s15), 15  ;;  %s592_s20 = smov (!%p142_p4, %s442_s20), 7 }
   0xe   : > { %s441_s16 = sshll.u32 %s590_s15, 3  ;;  %s443_s21 = sshll.u32 %s592_s20, 1 }
   0xf   : > { %s139_s19 = scalar_lea.vmem %s586_s0, %s441_s16  ;;  %s563_s24 = scalar_lea.vmem %s588_s2, %s443_s21 }
  0x10   : > { %v147_v3 = vld [vmem:[%s139_s19] sm:$0xff]  ;;  %v148_v5 = vld [vmem:[%s139_s19 + $0x8] sm:$0xff]  ;;  %v149_v7 = vld [vmem:[%s139_s19 + $0x10] sm:$0xff] }
  0x11   : > { %v151_v4 = vld [vmem:[%s139_s19 + $0x20] sm:$0xff]  ;;  %468 = vmatprep.mubr.msk.f32.mxu0 %vm157_vm0, %v147_v3  ;;  %v152_v6 = vld [vmem:[%s139_s19 + $0x28] sm:$0xff]  ;;  %v153_v8 = vld [vmem:[%s139_s19 + $0x30] sm:$0xff] }
  0x12   : > { %474 = vmatprep.mubr.msk.f32.mxu1 %vm157_vm0, %v151_v4  ;;  %469 = vmatmul.mubr.msk.f32.vlgmr.msra.gmra.mrb[0].mxu0 %vm157_vm0, %v148_v5  ;;  %v150_v9 = vld [vmem:[%s139_s19 + $0x18] sm:$0xff] }
  0x13   : > { %475 = vmatmul.mubr.msk.f32.vlgmr.msra.gmra.mrb[0].mxu1 %vm157_vm0, %v152_v6  ;;  %471 = vmatprep.mubr.msk.f32.mxu0 %vm157_vm0, %v149_v7  ;;  %v154_v10 = vld [vmem:[%s139_s19 + $0x38] sm:$0xff] }
  0x14   : > { %477 = vmatprep.mubr.msk.f32.mxu1 %vm157_vm0, %v153_v8 }
  0x16   : > { %472 = vmatmul.mubr.msk.f32.gmra.mrb[2].mxu0 %vm157_vm0, %v150_v9 }
  0x17   : > { %478 = vmatmul.mubr.msk.f32.gmra.mrb[2].mxu1 %vm157_vm0, %v154_v10 }
  0xe5   : > { %v470_v11 = vpop.f32.mrb[0].mxu0 }
  0xe6   : > { %v476_v12 = vpop.f32.mrb[0].mxu1  ;;  %v331_v13 = vrot.slane %v470_v11, 5  ;;  %v248_v15 = vpop.f32.mrb[1].mxu0 }
  0xe7   : > { %v337_v14 = vrot.slane %v476_v12, 5  ;;  %v268_v16 = vpop.f32.mrb[1].mxu1  ;;  %v288_v17 = vsel %vm287_vm1, %v248_v15, 0.0  ;;  %v330_v18 = vrot.slane %v248_v15, 5 }
  0xe8   : > { %v302_v19 = vsel %vm287_vm1, %v268_v16, 0.0  ;;  %v336_v20 = vrot.slane %v268_v16, 5  ;;  %v289_v21 = vrot.slane %v288_v17, 4 }
  0xe9   : > { %v303_v22 = vrot.slane %v302_v19, 4  ;;  %v332_v23 = vsel %vm329_vm2, %v330_v18, %v331_v13  ;;  %v473_v25 = vpop.f32.mrb[2].mxu0 }
  0xea   : > { %v338_v24 = vsel %vm329_vm2, %v336_v20, %v337_v14  ;;  %v479_v26 = vpop.f32.mrb[2].mxu1  ;;  %v290_v27 = vadd.f32 %v289_v21, %v288_v17  ;;  %v347_v28 = vsel %vm346_vm3, %v332_v23, 0.0  ;;  %v258_v31 = vpop.f32.mrb[3].mxu0  ;;  %v334_v35 = vrot.slane %v473_v25, 5 }
  0xeb   : > { %v304_v29 = vadd.f32 %v303_v22, %v302_v19  ;;  %v361_v30 = vsel %vm346_vm3, %v338_v24, 0.0  ;;  %v278_v32 = vpop.f32.mrb[3].mxu1  ;;  %v348_v33 = vrot.slane %v347_v28, 4  ;;  %v295_v38 = vsel %vm287_vm1, %v258_v31, 0.0 }
  0xec   : > { %v362_v34 = vrot.slane %v361_v30, 4  ;;  %v291_v36 = vrot.slane %v290_v27, 2  ;;  %v333_v39 = vrot.slane %v258_v31, 5  ;;  %v296_v42 = vrot.slane %v295_v38, 4 }
  0xed   : > { %v305_v37 = vrot.slane %v304_v29, 2  ;;  %v349_v40 = vadd.f32 %v348_v33, %v347_v28  ;;  %v309_v43 = vsel %vm287_vm1, %v278_v32, 0.0  ;;  %v340_v45 = vrot.slane %v479_v26, 5 }
  0xee   : > { %v363_v41 = vadd.f32 %v362_v34, %v361_v30  ;;  %v292_v44 = vadd.f32 %v291_v36, %v290_v27  ;;  %v335_v46 = vsel %vm329_vm2, %v333_v39, %v334_v35  ;;  %v310_v47 = vrot.slane %v309_v43, 4 }
  0xef   : > { %v350_v48 = vrot.slane %v349_v40, 2  ;;  %v297_v50 = vadd.f32 %v296_v42, %v295_v38  ;;  %v354_v51 = vsel %vm346_vm3, %v335_v46, 0.0  ;;  %v306_v53 = vadd.f32 %v305_v37, %v304_v29 }
  0xf0   : > { %v364_v49 = vrot.slane %v363_v41, 2  ;;  %v293_v52 = vrot.slane %v292_v44, 1  ;;  %v355_v54 = vrot.slane %v354_v51, 4  ;;  %v311_v55 = vadd.f32 %v310_v47, %v309_v43 }
  0xf1   : > { %v351_v56 = vadd.f32 %v350_v48, %v349_v40  ;;  %v298_v57 = vrot.slane %v297_v50, 2  ;;  %v339_v58 = vrot.slane %v278_v32, 5  ;;  %v307_v2 = vrot.slane %v306_v53, 1 }
  0xf2   : > { %v294_v59 = vadd.f32 %v293_v52, %v292_v44  ;;  %v356_v60 = vadd.f32 %v355_v54, %v354_v51  ;;  %v312_v61 = vrot.slane %v311_v55, 2  ;;  %v365_v63 = vadd.f32 %v364_v49, %v363_v41 }
  0xf3   : > { %v352_v62 = vrot.slane %v351_v56, 1  ;;  %v299_v0 = vadd.f32 %v298_v57, %v297_v50  ;;  %v341_v1 = vsel %vm329_vm2, %v339_v58, %v340_v45  ;;  %v308_v14 = vadd.f32 %v307_v2, %v306_v53 }
  0xf4   : > { %317 = vst.msk [vmem:[%s563_s24] sm:$0x1] %vm316_vm4, %v294_v59  ;;  %v357_v3 = vrot.slane %v356_v60, 2  ;;  %v313_v4 = vadd.f32 %v312_v61, %v311_v55  ;;  %v368_v5 = vsel %vm346_vm3, %v341_v1, 0.0  ;;  %v366_v11 = vrot.slane %v365_v63, 1 }
  0xf5   : > { %v353_v6 = vadd.f32 %v352_v62, %v351_v56  ;;  %v300_v7 = vrot.slane %v299_v0, 1  ;;  %v369_v8 = vrot.slane %v368_v5, 4  ;;  %319 = vst.msk [vmem:[%s563_s24 + $0x4] sm:$0x1] %vm316_vm4, %v308_v14 }
  0xf6   : > { %v358_v9 = vadd.f32 %v357_v3, %v356_v60  ;;  %v314_v10 = vrot.slane %v313_v4, 1  ;;  %v367_v19 = vadd.f32 %v366_v11, %v365_v63 }
  0xf7   : > { %375 = vst.msk [vmem:[%s563_s24 + $0x1] sm:$0x1] %vm316_vm4, %v353_v6  ;;  %v301_v12 = vadd.f32 %v300_v7, %v299_v0  ;;  %v370_v13 = vadd.f32 %v369_v8, %v368_v5 }
  0xf8   : > { %v359_v15 = vrot.slane %v358_v9, 1  ;;  %v315_v16 = vadd.f32 %v314_v10, %v313_v4  ;;  %377 = vst.msk [vmem:[%s563_s24 + $0x5] sm:$0x1] %vm316_vm4, %v367_v19 }
  0xf9   : > { %318 = vst.msk [vmem:[%s563_s24 + $0x2] sm:$0x1] %vm316_vm4, %v301_v12  ;;  %v371_v17 = vrot.slane %v370_v13, 2 }
  0xfa   : > { %v360_v18 = vadd.f32 %v359_v15, %v358_v9  ;;  %320 = vst.msk [vmem:[%s563_s24 + $0x6] sm:$0x1] %vm316_vm4, %v315_v16 }
  0xfb   : > { %v372_v20 = vadd.f32 %v371_v17, %v370_v13 }
  0xfc   : > { %376 = vst.msk [vmem:[%s563_s24 + $0x3] sm:$0x1] %vm316_vm4, %v360_v18 }
  0xfd   : > { %v373_v21 = vrot.slane %v372_v20, 1 }
  0xff   : > { %v374_v22 = vadd.f32 %v373_v21, %v372_v20 }
 0x101   : > { %378 = vst.msk [vmem:[%s563_s24 + $0x7] sm:$0x1] %vm316_vm4, %v374_v22 }
 0x102 PF: > { %s12_s9 = sadd.s32 1, %s500_s9  }
 0x103   : > { %p9_p5 = scmp.ge.s32.totalorder %s12_s9, 4  }
 0x105   :  { %11 = sbr.rel (!%p9_p5) target bundleno = 1 (0x1), region = 58 }

</bundles_post_ra>
